<compile_context>
chip_gen: v7x
topology: tpu7x:2x2x1
jax: 0.10.0
libtpu: 0.0.40
codegen_flags: <defaults>
</compile_context>

<pallas_src>
import functools

import jax
import jax.numpy as jnp
from jax.experimental import pallas as pl
from jax.experimental.pallas import tpu as pltpu

EPS = 1e-5  # nn.LayerNorm default eps


# --------------------------------------------------------------------------- #
# Small helpers                                                                #
# --------------------------------------------------------------------------- #
def _tpu_vmem_capacity_bytes():
    """Physical per-core VMEM, with a conservative fallback (v7x = 64 MiB)."""
    try:
        return int(pltpu.get_tpu_info().vmem_capacity_bytes)
    except Exception:
        return 64 * 1024 * 1024


def _device_kind():
    try:
        return jax.devices()[0].device_kind.lower()
    except Exception:
        return ""


def _shrink_to_divisor(n, v):
    """Largest value <= v (and >= 1) that divides n."""
    v = max(1, min(int(n), int(v)))
    while n % v:
        v -= 1
    return v


def _layernorm(v, gamma, beta):
    """PyTorch nn.LayerNorm over the last axis (biased variance), f32 math."""
    v = v.astype(jnp.float32)
    mean = jnp.mean(v, axis=-1, keepdims=True)
    var = jnp.mean(jnp.square(v - mean), axis=-1, keepdims=True)
    return (v - mean) * jax.lax.rsqrt(var + EPS) * gamma + beta


# --------------------------------------------------------------------------- #
# Kernel 1: LN(x) -> fused QKV projection -> per-slice LN (+ scale folded in Q)#
# --------------------------------------------------------------------------- #
def _qkv_projection_kernel(x_ref, w_ref, g_ref, b_ref, q_ref, k_ref, v_ref, *,
                           scale):
    bb, ts, d = x_ref.shape
    g = g_ref[...]            # (1, D) -- 2-D so it maps cleanly on sublane/lane
    b = b_ref[...]            # (1, D)

    # Flatten packed batch rows: one tall MXU M dim instead of bb tiny matmuls.
    x = x_ref[...].reshape(bb * ts, d)
    xn = _layernorm(x, g, b)

    # Single fused (D, 3D) weight: one MXU weight push for Q, K and V.
    w = w_ref[...]
    qkv = jnp.dot(xn.astype(w.dtype), w, preferred_element_type=jnp.float32)

    # LayerNorm each D-wide slice separately (statistics over D, not 3D).
    # The 1/sqrt(D) softmax scale is folded into Q here (f32, pre-cast), so the
    # flash kernel's inner KV loop needs no per-step scaling multiply.
    q = _layernorm(qkv[:, 0 * d:1 * d], g, b) * scale
    k = _layernorm(qkv[:, 1 * d:2 * d], g, b)
    v = _layernorm(qkv[:, 2 * d:3 * d], g, b)

    q_ref[...] = q.reshape(bb, ts, d).astype(q_ref.dtype)
    k_ref[...] = k.reshape(bb, ts, d).astype(k_ref.dtype)
    v_ref[...] = v.reshape(bb, ts, d).astype(v_ref.dtype)


# --------------------------------------------------------------------------- #
# Kernel 2: flash attention (online softmax over KV tiles)                     #
# --------------------------------------------------------------------------- #
def _flash_attention_kernel(q_ref, k_ref, v_ref, o_ref, m_sc, l_sc, acc_sc):
    ki = pl.program_id(2)

    @pl.when(ki == 0)
    def _():
        m_sc[...] = jnp.full_like(m_sc, -jnp.inf)
        l_sc[...] = jnp.zeros_like(l_sc)
        acc_sc[...] = jnp.zeros_like(acc_sc)

    q = q_ref[...]            # (bb, bq,  D) -- already scaled by 1/sqrt(D)
    k = k_ref[...]            # (bb, bkv, D)
    v = v_ref[...]            # (bb, bkv, D)

    # Contract the shared feature dim directly: no k.T materialization (XLU/VMEM
    # copy avoided); MXU accumulates in f32.  No softmax scale here (folded in Q).
    s = jnp.einsum("bqd,bkd->bqk", q, k, preferred_element_type=jnp.float32)

    m_prev = m_sc[...]
    m_new = jnp.maximum(m_prev, s.max(axis=-1, keepdims=True))
    alpha = jnp.exp(m_prev - m_new)
    p = jnp.exp(s - m_new)
    l_sc[...] = alpha * l_sc[...] + p.sum(axis=-1, keepdims=True)
    acc_sc[...] = alpha * acc_sc[...] + jnp.einsum(
        "bqk,bkd->bqd", p.astype(v.dtype), v,
        preferred_element_type=jnp.float32)
    m_sc[...] = m_new

    # TODO(synk): nn.Dropout(0.1) on the attention weights is identity in eval
    # mode; training-mode dropout (pltpu.prng_random_bits mask on p) not applied.

    @pl.when(ki == pl.num_programs(2) - 1)
    def _():
        # Exact reciprocal: runs once per (b, q-tile), so exact parity is free.
        o_ref[...] = (acc_sc[...] *
                      pl.reciprocal(l_sc[...], approx=False)).astype(o_ref.dtype)


# --------------------------------------------------------------------------- #
# Wrapper                                                                      #
# --------------------------------------------------------------------------- #
def self_attention(x, wq, wk, wv, gamma, beta, *,
                   compute_dtype=jnp.bfloat16,
                   out_dtype=None,
                   block_q=None, block_kv=None, block_seq_proj=256):
    B, S, D = x.shape
    out_dtype = x.dtype if out_dtype is None else out_dtype
    scale = 1.0 / (float(D) ** 0.5)
    itemsize = jnp.dtype(compute_dtype).itemsize

    # ---- generation-aware budgets & tile defaults -----------------------------
    vmem_cap = _tpu_vmem_capacity_bytes()
    vmem_limit = int(0.75 * vmem_cap)          # 96 MiB on v5e/v6e, 48 MiB on v7x

    kind = _device_kind()
    wide_mxu = ("v6" in kind) or ("v7" in kind)   # 256x256 MXU generations
    if block_q is None:
        block_q = 256 if wide_mxu else 128        # v5e MXU is 128-wide: bq=256 buys nothing
    if block_kv is None:
        block_kv = 256                            # larger KV tile amortizes softmax epilogue

    # Fused (D, 3D) projection weight built once in the wrapper.
    w_qkv = jnp.concatenate([wq, wk, wv], axis=1).astype(compute_dtype)
    g2 = gamma.reshape(1, D).astype(jnp.float32)
    b2 = beta.reshape(1, D).astype(jnp.float32)

    # ---- pass-1 tile selection -------------------------------------------------
    ts = _shrink_to_divisor(S, min(block_seq_proj, S))
    # Pack batch rows per projection step when S is small (fills the MXU M dim,
    # amortizes fixed per-step overhead) ...
    bb_proj = _shrink_to_divisor(B, max(1, 256 // ts))
    # ... but keep >= 2 "parallel" grid steps so v7x's second TensorCore is used.
    while bb_proj > 1 and (B // bb_proj) * (S // ts) < 2:
        bb_proj = _shrink_to_divisor(B, bb_proj // 2)

    # Single-buffer the resident fused weight only when double-buffering it would
    # eat a meaningful slice of the VMEM budget (large-D configs).
    w_bytes = D * 3 * D * itemsize
    if 2 * w_bytes > vmem_limit // 4:
        w_spec = pl.BlockSpec((D, 3 * D), lambda i, s: (0, 0),
                              pipeline_mode=pl.Buffered(1))
    else:
        w_spec = pl.BlockSpec((D, 3 * D), lambda i, s: (0, 0))
    gb_spec = pl.BlockSpec((1, D), lambda i, s: (0, 0))        # gamma/beta resident

    # ---- pass 1: fused QKV projection + LayerNorms -----------------------------
    row_spec = pl.BlockSpec((bb_proj, ts, D), lambda i, s: (i, s, 0))
    q, k, v = pl.pallas_call(
        functools.partial(_qkv_projection_kernel, scale=scale),
        out_shape=(jax.ShapeDtypeStruct((B, S, D), compute_dtype),) * 3,
        grid_spec=pltpu.PrefetchScalarGridSpec(
            num_scalar_prefetch=0,
            grid=(B // bb_proj, S // ts),
            in_specs=[
                row_spec,      # x tile
                w_spec,        # W_qkv resident (single-buffered when large)
                gb_spec,       # gamma resident
                gb_spec,       # beta resident
            ],
            out_specs=(row_spec, row_spec, row_spec),
        ),
        compiler_params=pltpu.CompilerParams(
            dimension_semantics=("parallel", "parallel"),
            vmem_limit_bytes=vmem_limit),
    )(x, w_qkv, g2, b2)

    # ---- pass-2 tile selection -------------------------------------------------
    bq = _shrink_to_divisor(S, min(block_q, S))
    bkv = _shrink_to_divisor(S, min(block_kv, S))

    # For tiny S, pack batch rows per attention step; cap packing so the product
    # of "parallel" grid extents stays >= 2 (second TensorCore on v7x).
    bb_att = _shrink_to_divisor(B, max(1, 128 // S)) if S < 128 else 1
    while bb_att > 1 and (B // bb_att) * (S // bq) < 2:
        bb_att = _shrink_to_divisor(B, bb_att // 2)

    # Light VMEM-budget check for the double-buffered attention working set;
    # shrink the KV tile first (growing bkv is what we can afford to lose).
    def _attn_bytes(bq_, bkv_):
        q_b = 2 * bb_att * bq_ * D * itemsize                 # q double-buffered
        kv_b = 2 * 2 * bb_att * bkv_ * D * itemsize           # k + v double-buffered
        o_b = 2 * bb_att * bq_ * D * jnp.dtype(out_dtype).itemsize
        scr = bb_att * bq_ * (D + 2) * 4                      # f32 acc + m + l
        return q_b + kv_b + o_b + scr

    while bkv > 128 and _attn_bytes(bq, bkv) > vmem_limit // 2:
        bkv = _shrink_to_divisor(S, bkv // 2)
    while bq > 128 and _attn_bytes(bq, bkv) > vmem_limit // 2:
        bq = _shrink_to_divisor(S, bq // 2)

    # ---- pass 2: flash attention ------------------------------------------------
    out = pl.pallas_call(
        _flash_attention_kernel,
        out_shape=jax.ShapeDtypeStruct((B, S, D), out_dtype),
        grid_spec=pltpu.PrefetchScalarGridSpec(
            num_scalar_prefetch=0,
            grid=(B // bb_att, S // bq, S // bkv),
            in_specs=[
                pl.BlockSpec((bb_att, bq, D), lambda b, qi, ki: (b, qi, 0)),
                pl.BlockSpec((bb_att, bkv, D), lambda b, qi, ki: (b, ki, 0)),
                pl.BlockSpec((bb_att, bkv, D), lambda b, qi, ki: (b, ki, 0)),
            ],
            # Same output block across the KV axis -> resident accumulator output.
            out_specs=pl.BlockSpec((bb_att, bq, D), lambda b, qi, ki: (b, qi, 0)),
            scratch_shapes=[
                pltpu.VMEM((bb_att, bq, 1), jnp.float32),   # running max
                pltpu.VMEM((bb_att, bq, 1), jnp.float32),   # running sum
                pltpu.VMEM((bb_att, bq, D), jnp.float32),   # output accumulator
            ],
        ),
        compiler_params=pltpu.CompilerParams(
            dimension_semantics=("parallel", "parallel", "arbitrary"),
            vmem_limit_bytes=vmem_limit),
    )(q, k, v)
    return out


# --------------------------------------------------------------------------- #
# Pure-JAX reference                                                           #
# --------------------------------------------------------------------------- #
def reference(x, wq, wk, wv, gamma, beta):
    def ln(v):
        mean = jnp.mean(v, axis=-1, keepdims=True)
        var = jnp.mean((v - mean) ** 2, axis=-1, keepdims=True)
        return (v - mean) / jnp.sqrt(var + EPS) * gamma + beta

    d = x.shape[-1]
    xn = ln(x)
    q, k, v = ln(xn @ wq), ln(xn @ wk), ln(xn @ wv)
    scores = jnp.einsum("bsd,btd->bst", q, k) / (d ** 0.5)
    attn = jax.nn.softmax(scores, axis=-1)
    return jnp.einsum("bst,btd->bsd", attn, v)


if __name__ == "__main__":
    B, S, D = 2, 8, 32   # batch, seq, feature_dim

    key = jax.random.PRNGKey(0)
    kx, kq, kk, kv = jax.random.split(key, 4)

    x = jax.random.normal(kx, (B, S, D), dtype=jnp.float32)
    # nn.Parameter(torch.randn(D, D)) -> standard-normal init
    wq = jax.random.normal(kq, (D, D), dtype=jnp.float32)
    wk = jax.random.normal(kk, (D, D), dtype=jnp.float32)
    wv = jax.random.normal(kv, (D, D), dtype=jnp.float32)
    # nn.LayerNorm default affine init: weight=1, bias=0 (single shared norm)
    gamma = jnp.ones((D,), dtype=jnp.float32)
    beta = jnp.zeros((D,), dtype=jnp.float32)

    ref = reference(x, wq, wk, wv, gamma, beta)

    # f32 MXU path (exact softmax normalization -> tight match to reference).
    out_f32 = jax.block_until_ready(
        self_attention(x, wq, wk, wv, gamma, beta, compute_dtype=jnp.float32))
    assert out_f32.shape == (B, S, D)
    assert jnp.allclose(out_f32, ref, atol=5e-3, rtol=5e-3), "f32 mismatch vs reference"

    # bf16-input matmul path (fast MXU path on v6e/v7x); relaxed tolerance for the
    # deliberate bf16 quantization of the Q/K/V intermediates.
    out_bf16 = jax.block_until_ready(
        self_attention(x, wq, wk, wv, gamma, beta, compute_dtype=jnp.bfloat16))
    assert out_bf16.shape == (B, S, D)
    assert jnp.allclose(out_bf16, ref, atol=5e-2, rtol=5e-2), "bf16 mismatch vs reference"

    print("KERNEL_OK")
</pallas_src>

<mosaic_0001>
module attributes {stable_mosaic.version = 11 : i64} {
  func.func @_qkv_projection_kernel(%arg0: i32, %arg1: i32, %arg2: memref<1x8x32xf32, #tpu.memory_space<vmem>>, %arg3: memref<32x96xf32, #tpu.memory_space<vmem>>, %arg4: memref<1x32xf32, #tpu.memory_space<vmem>>, %arg5: memref<1x32xf32, #tpu.memory_space<vmem>>, %arg6: memref<1x8x32xf32, #tpu.memory_space<vmem>>, %arg7: memref<1x8x32xf32, #tpu.memory_space<vmem>>, %arg8: memref<1x8x32xf32, #tpu.memory_space<vmem>>) attributes {dimension_semantics = [#tpu.dimension_semantics<parallel>, #tpu.dimension_semantics<parallel>], iteration_bounds = array<i64: 2, 1>, scalar_prefetch = 0 : i64, scratch_operands = 0 : i64, tpu.core_type = #tpu.core_type<tc>, window_params = [{transform_indices = @transform_0, window_bounds = array<i64: 1, 8, 32>}, {pipeline_mode = #tpu.pipeline_mode<synchronous>, transform_indices = @transform_1, window_bounds = array<i64: 32, 96>}, {pipeline_mode = #tpu.pipeline_mode<synchronous>, transform_indices = @transform_2, window_bounds = array<i64: 1, 32>}, {pipeline_mode = #tpu.pipeline_mode<synchronous>, transform_indices = @transform_3, window_bounds = array<i64: 1, 32>}, {transform_indices = @transform_4, window_bounds = array<i64: 1, 8, 32>}, {transform_indices = @transform_5, window_bounds = array<i64: 1, 8, 32>}, {transform_indices = @transform_6, window_bounds = array<i64: 1, 8, 32>}]} {
    %c0 = arith.constant 0 : index
    %c0_0 = arith.constant 0 : index
    %0 = vector.load %arg4[%c0, %c0_0] : memref<1x32xf32, #tpu.memory_space<vmem>>, vector<1x32xf32>
    %c0_1 = arith.constant 0 : index
    %c0_2 = arith.constant 0 : index
    %1 = vector.load %arg5[%c0_1, %c0_2] : memref<1x32xf32, #tpu.memory_space<vmem>>, vector<1x32xf32>
    %c0_3 = arith.constant 0 : index
    %c0_4 = arith.constant 0 : index
    %c0_5 = arith.constant 0 : index
    %2 = vector.load %arg2[%c0_3, %c0_4, %c0_5] : memref<1x8x32xf32, #tpu.memory_space<vmem>>, vector<1x8x32xf32>
    %3 = vector.shape_cast %2 : vector<1x8x32xf32> to vector<8x32xf32>
    %cst = arith.constant dense<0.000000e+00> : vector<8xf32>
    %4 = vector.multi_reduction <add>, %3, %cst [1] : vector<8x32xf32> to vector<8xf32>
    %5 = vector.shape_cast %4 : vector<8xf32> to vector<8x1xf32>
    %cst_6 = arith.constant 3.200000e+01 : f32
    %6 = vector.broadcast %cst_6 : f32 to vector<8x1xf32>
    %7 = arith.divf %5, %6 : vector<8x1xf32>
    %8 = vector.broadcast %7 : vector<8x1xf32> to vector<8x32xf32>
    %9 = arith.subf %3, %8 : vector<8x32xf32>
    %10 = arith.mulf %9, %9 : vector<8x32xf32>
    %cst_7 = arith.constant dense<0.000000e+00> : vector<8xf32>
    %11 = vector.multi_reduction <add>, %10, %cst_7 [1] : vector<8x32xf32> to vector<8xf32>
    %12 = vector.shape_cast %11 : vector<8xf32> to vector<8x1xf32>
    %cst_8 = arith.constant 3.200000e+01 : f32
    %13 = vector.broadcast %cst_8 : f32 to vector<8x1xf32>
    %14 = arith.divf %12, %13 : vector<8x1xf32>
    %15 = vector.broadcast %7 : vector<8x1xf32> to vector<8x32xf32>
    %16 = arith.subf %3, %15 : vector<8x32xf32>
    %cst_9 = arith.constant 9.99999974E-6 : f32
    %17 = vector.broadcast %cst_9 : f32 to vector<8x1xf32>
    %18 = arith.addf %14, %17 : vector<8x1xf32>
    %19 = math.rsqrt %18 : vector<8x1xf32>
    %20 = vector.broadcast %19 : vector<8x1xf32> to vector<8x32xf32>
    %21 = arith.mulf %16, %20 : vector<8x32xf32>
    %22 = vector.broadcast %0 : vector<1x32xf32> to vector<8x32xf32>
    %23 = arith.mulf %21, %22 : vector<8x32xf32>
    %24 = vector.broadcast %1 : vector<1x32xf32> to vector<8x32xf32>
    %25 = arith.addf %23, %24 : vector<8x32xf32>
    %c0_10 = arith.constant 0 : index
    %c0_11 = arith.constant 0 : index
    %26 = vector.load %arg3[%c0_10, %c0_11] : memref<32x96xf32, #tpu.memory_space<vmem>>, vector<32x96xf32>
    %cst_12 = arith.constant dense<0.000000e+00> : vector<8x96xf32>
    %27 = tpu.matmul %25, %26, %cst_12 {dimension_numbers = #tpu.dot_dimension_numbers<[1], [0], [0], [1], [0, 0, 1, 1], [], []>} : vector<8x32xf32>, vector<32x96xf32>, vector<8x96xf32> -> vector<8x96xf32>
    %28 = vector.extract_strided_slice %27 {offsets = [0, 0], sizes = [8, 32], strides = [1, 1]} : vector<8x96xf32> to vector<8x32xf32>
    %cst_13 = arith.constant dense<0.000000e+00> : vector<8xf32>
    %29 = vector.multi_reduction <add>, %28, %cst_13 [1] : vector<8x32xf32> to vector<8xf32>
    %30 = vector.shape_cast %29 : vector<8xf32> to vector<8x1xf32>
    %cst_14 = arith.constant 3.200000e+01 : f32
    %31 = vector.broadcast %cst_14 : f32 to vector<8x1xf32>
    %32 = arith.divf %30, %31 : vector<8x1xf32>
    %33 = vector.broadcast %32 : vector<8x1xf32> to vector<8x32xf32>
    %34 = arith.subf %28, %33 : vector<8x32xf32>
    %35 = arith.mulf %34, %34 : vector<8x32xf32>
    %cst_15 = arith.constant dense<0.000000e+00> : vector<8xf32>
    %36 = vector.multi_reduction <add>, %35, %cst_15 [1] : vector<8x32xf32> to vector<8xf32>
    %37 = vector.shape_cast %36 : vector<8xf32> to vector<8x1xf32>
    %cst_16 = arith.constant 3.200000e+01 : f32
    %38 = vector.broadcast %cst_16 : f32 to vector<8x1xf32>
    %39 = arith.divf %37, %38 : vector<8x1xf32>
    %40 = vector.broadcast %32 : vector<8x1xf32> to vector<8x32xf32>
    %41 = arith.subf %28, %40 : vector<8x32xf32>
    %cst_17 = arith.constant 9.99999974E-6 : f32
    %42 = vector.broadcast %cst_17 : f32 to vector<8x1xf32>
    %43 = arith.addf %39, %42 : vector<8x1xf32>
    %44 = math.rsqrt %43 : vector<8x1xf32>
    %45 = vector.broadcast %44 : vector<8x1xf32> to vector<8x32xf32>
    %46 = arith.mulf %41, %45 : vector<8x32xf32>
    %47 = vector.broadcast %0 : vector<1x32xf32> to vector<8x32xf32>
    %48 = arith.mulf %46, %47 : vector<8x32xf32>
    %49 = vector.broadcast %1 : vector<1x32xf32> to vector<8x32xf32>
    %50 = arith.addf %48, %49 : vector<8x32xf32>
    %cst_18 = arith.constant 0.176776692 : f32
    %51 = vector.broadcast %cst_18 : f32 to vector<8x32xf32>
    %52 = arith.mulf %50, %51 : vector<8x32xf32>
    %53 = vector.extract_strided_slice %27 {offsets = [0, 32], sizes = [8, 32], strides = [1, 1]} : vector<8x96xf32> to vector<8x32xf32>
    %cst_19 = arith.constant dense<0.000000e+00> : vector<8xf32>
    %54 = vector.multi_reduction <add>, %53, %cst_19 [1] : vector<8x32xf32> to vector<8xf32>
    %55 = vector.shape_cast %54 : vector<8xf32> to vector<8x1xf32>
    %cst_20 = arith.constant 3.200000e+01 : f32
    %56 = vector.broadcast %cst_20 : f32 to vector<8x1xf32>
    %57 = arith.divf %55, %56 : vector<8x1xf32>
    %58 = vector.broadcast %57 : vector<8x1xf32> to vector<8x32xf32>
    %59 = arith.subf %53, %58 : vector<8x32xf32>
    %60 = arith.mulf %59, %59 : vector<8x32xf32>
    %cst_21 = arith.constant dense<0.000000e+00> : vector<8xf32>
    %61 = vector.multi_reduction <add>, %60, %cst_21 [1] : vector<8x32xf32> to vector<8xf32>
    %62 = vector.shape_cast %61 : vector<8xf32> to vector<8x1xf32>
    %cst_22 = arith.constant 3.200000e+01 : f32
    %63 = vector.broadcast %cst_22 : f32 to vector<8x1xf32>
    %64 = arith.divf %62, %63 : vector<8x1xf32>
    %65 = vector.broadcast %57 : vector<8x1xf32> to vector<8x32xf32>
    %66 = arith.subf %53, %65 : vector<8x32xf32>
    %cst_23 = arith.constant 9.99999974E-6 : f32
    %67 = vector.broadcast %cst_23 : f32 to vector<8x1xf32>
    %68 = arith.addf %64, %67 : vector<8x1xf32>
    %69 = math.rsqrt %68 : vector<8x1xf32>
    %70 = vector.broadcast %69 : vector<8x1xf32> to vector<8x32xf32>
    %71 = arith.mulf %66, %70 : vector<8x32xf32>
    %72 = vector.broadcast %0 : vector<1x32xf32> to vector<8x32xf32>
    %73 = arith.mulf %71, %72 : vector<8x32xf32>
    %74 = vector.broadcast %1 : vector<1x32xf32> to vector<8x32xf32>
    %75 = arith.addf %73, %74 : vector<8x32xf32>
    %76 = vector.extract_strided_slice %27 {offsets = [0, 64], sizes = [8, 32], strides = [1, 1]} : vector<8x96xf32> to vector<8x32xf32>
    %cst_24 = arith.constant dense<0.000000e+00> : vector<8xf32>
    %77 = vector.multi_reduction <add>, %76, %cst_24 [1] : vector<8x32xf32> to vector<8xf32>
    %78 = vector.shape_cast %77 : vector<8xf32> to vector<8x1xf32>
    %cst_25 = arith.constant 3.200000e+01 : f32
    %79 = vector.broadcast %cst_25 : f32 to vector<8x1xf32>
    %80 = arith.divf %78, %79 : vector<8x1xf32>
    %81 = vector.broadcast %80 : vector<8x1xf32> to vector<8x32xf32>
    %82 = arith.subf %76, %81 : vector<8x32xf32>
    %83 = arith.mulf %82, %82 : vector<8x32xf32>
    %cst_26 = arith.constant dense<0.000000e+00> : vector<8xf32>
    %84 = vector.multi_reduction <add>, %83, %cst_26 [1] : vector<8x32xf32> to vector<8xf32>
    %85 = vector.shape_cast %84 : vector<8xf32> to vector<8x1xf32>
    %cst_27 = arith.constant 3.200000e+01 : f32
    %86 = vector.broadcast %cst_27 : f32 to vector<8x1xf32>
    %87 = arith.divf %85, %86 : vector<8x1xf32>
    %88 = vector.broadcast %80 : vector<8x1xf32> to vector<8x32xf32>
    %89 = arith.subf %76, %88 : vector<8x32xf32>
    %cst_28 = arith.constant 9.99999974E-6 : f32
    %90 = vector.broadcast %cst_28 : f32 to vector<8x1xf32>
    %91 = arith.addf %87, %90 : vector<8x1xf32>
    %92 = math.rsqrt %91 : vector<8x1xf32>
    %93 = vector.broadcast %92 : vector<8x1xf32> to vector<8x32xf32>
    %94 = arith.mulf %89, %93 : vector<8x32xf32>
    %95 = vector.broadcast %0 : vector<1x32xf32> to vector<8x32xf32>
    %96 = arith.mulf %94, %95 : vector<8x32xf32>
    %97 = vector.broadcast %1 : vector<1x32xf32> to vector<8x32xf32>
    %98 = arith.addf %96, %97 : vector<8x32xf32>
    %99 = vector.shape_cast %52 : vector<8x32xf32> to vector<1x8x32xf32>
    %c0_29 = arith.constant 0 : index
    %c0_30 = arith.constant 0 : index
    %c0_31 = arith.constant 0 : index
    %100 = vector.load %arg6[%c0_29, %c0_30, %c0_31] : memref<1x8x32xf32, #tpu.memory_space<vmem>>, vector<1x8x32xf32>
    tpu.vector_store %arg6[%c0_29, %c0_30, %c0_31], %99 {strides = array<i32>} : memref<1x8x32xf32, #tpu.memory_space<vmem>>, vector<1x8x32xf32>,
    %101 = vector.shape_cast %75 : vector<8x32xf32> to vector<1x8x32xf32>
    %c0_32 = arith.constant 0 : index
    %c0_33 = arith.constant 0 : index
    %c0_34 = arith.constant 0 : index
    %102 = vector.load %arg7[%c0_32, %c0_33, %c0_34] : memref<1x8x32xf32, #tpu.memory_space<vmem>>, vector<1x8x32xf32>
    tpu.vector_store %arg7[%c0_32, %c0_33, %c0_34], %101 {strides = array<i32>} : memref<1x8x32xf32, #tpu.memory_space<vmem>>, vector<1x8x32xf32>,
    %103 = vector.shape_cast %98 : vector<8x32xf32> to vector<1x8x32xf32>
    %c0_35 = arith.constant 0 : index
    %c0_36 = arith.constant 0 : index
    %c0_37 = arith.constant 0 : index
    %104 = vector.load %arg8[%c0_35, %c0_36, %c0_37] : memref<1x8x32xf32, #tpu.memory_space<vmem>>, vector<1x8x32xf32>
    tpu.vector_store %arg8[%c0_35, %c0_36, %c0_37], %103 {strides = array<i32>} : memref<1x8x32xf32, #tpu.memory_space<vmem>>, vector<1x8x32xf32>,
    return
  }
  func.func @transform_0(%arg0: i32, %arg1: i32) -> (i32, i32, i32) {
    %c0_i32 = arith.constant 0 : i32
    %c0_i32_0 = arith.constant 0 : i32
    return %arg0, %arg1, %c0_i32 : i32, i32, i32
  }
  func.func @transform_1(%arg0: i32, %arg1: i32) -> (i32, i32) {
    %c0_i32 = arith.constant 0 : i32
    %c0_i32_0 = arith.constant 0 : i32
    %c0_i32_1 = arith.constant 0 : i32
    return %c0_i32, %c0_i32_0 : i32, i32
  }
  func.func @transform_2(%arg0: i32, %arg1: i32) -> (i32, i32) {
    %c0_i32 = arith.constant 0 : i32
    %c0_i32_0 = arith.constant 0 : i32
    %c0_i32_1 = arith.constant 0 : i32
    return %c0_i32, %c0_i32_0 : i32, i32
  }
  func.func @transform_3(%arg0: i32, %arg1: i32) -> (i32, i32) {
    %c0_i32 = arith.constant 0 : i32
    %c0_i32_0 = arith.constant 0 : i32
    %c0_i32_1 = arith.constant 0 : i32
    return %c0_i32, %c0_i32_0 : i32, i32
  }
  func.func @transform_4(%arg0: i32, %arg1: i32) -> (i32, i32, i32) {
    %c0_i32 = arith.constant 0 : i32
    %c0_i32_0 = arith.constant 0 : i32
    return %arg0, %arg1, %c0_i32 : i32, i32, i32
  }
  func.func @transform_5(%arg0: i32, %arg1: i32) -> (i32, i32, i32) {
    %c0_i32 = arith.constant 0 : i32
    %c0_i32_0 = arith.constant 0 : i32
    return %arg0, %arg1, %c0_i32 : i32, i32, i32
  }
  func.func @transform_6(%arg0: i32, %arg1: i32) -> (i32, i32, i32) {
    %c0_i32 = arith.constant 0 : i32
    %c0_i32_0 = arith.constant 0 : i32
    return %arg0, %arg1, %c0_i32 : i32, i32, i32
  }
}

</mosaic_0001>

<bundles_post_ra>
// kernel: tpu_custom_call.1
= control target key start
LH: loop header
LB: loop body
LE: loop exit
PB: predicated region body
PF: predicated region fallthrough
CT: control target
= control target key end

     0   :  { %s1450_s0 = inlined_call_operand.hbm [shape: f32[2,8,32], index: 0, kind: input, shape index: {}]   ;;  %s1451_s1 = inlined_call_operand.hbm [shape: f32[32,96], index: 1, kind: input, shape index: {}]   ;;  %s1452_s2 = inlined_call_operand.vmem [shape: f32[1,32], index: 2, kind: input, shape index: {}]   ;;  %s1453_s3 = inlined_call_operand.vmem [shape: f32[1,32], index: 3, kind: input, shape index: {}]   ;;  %s1454_s4 = inlined_call_operand.hbm [shape: f32[2,8,32], index: 4, kind: output, shape index: {0}]   ;;  %s1455_s5 = inlined_call_operand.hbm [shape: f32[2,8,32], index: 5, kind: output, shape index: {1}]   ;;  %s1456_s6 = inlined_call_operand.hbm [shape: f32[2,8,32], index: 6, kind: output, shape index: {2}]  }
   0x1   :  { %1461 = sst [smem:[#allocation15_spill]] %s1451_s1 }
   0x2   :  { %12 = vsyncpa [#allocation3], 0 }
   0x3   :  { %14 = vsyncpa [#allocation3 + $0x1], 0 }
   0x4   :  { %15 = vsyncpa [#allocation6], 0 }
   0x5   :  { %16 = vsyncpa [#allocation4], 0 }
   0x6   :  { %18 = vsyncpa [#allocation4 + $0x1], 0 }
   0x7   :  { %19 = vsyncpa [#allocation9], 0 }
   0x8   :  { %21 = vsyncpa [#allocation9 + $0x1], 0  ;;  %s1119_s21 = smov 0   ;;  %s1121_s22 = smov 0  }
   0x9   :  { %s1123_s23 = smov 0   ;;  %s1125_s24 = smov 0  }
   0xa   :  { %s1127_s25 = smov 0   ;;  %s1129_s26 = smov 0  }
   0xb LB: > { %s1150_s27 = sadd.s32 4294967295, %s1069_s26   ;;  %s1460_s28 = sadd.s32 4294967294, %s1069_s26   ;;  %s1069_s26 = sphi %s1129_s26, %s27_s26   ;;  %s1065_s25 = sphi %s1127_s25, %s1482_s25   ;;  %s1061_s24 = sphi %s1125_s24, %s1481_s24   ;;  %s1057_s23 = sphi %s1123_s23, %s1480_s23   ;;  %s1053_s22 = sphi %s1121_s22, %s1479_s22   ;;  %s1049_s21 = sphi %s1119_s21, %s1478_s21  }
   0xc   : > { %p61_p0 = scmp.ne.s32.totalorder %s1053_s22, %s1049_s21  ;;  %p1457_p1 = scmp.eq.s32.totalorder %s1150_s27, 0 }
   0xd   : > { %p156_p3 = scmp.eq.s32.totalorder %s1460_s28, 1  ;;  %p722_p5 = scmp.ge.s32.totalorder %s1069_s26, 1 }
   0xe   : > { %p1161_p4 = por %p1457_p1, %p61_p0  ;;  %p219_p7 = scmp.lt.s32.totalorder %s1069_s26, 3 }
   0xf   : > { %p1166_p6 = por %p156_p3, %p61_p0  ;;  %s1071_s8 = smov [#allocation5]  }
  0x10   : > { %s1462_s29 = scalar_select %p1161_p4, 1, 0 }
  0x11   : > { %s1463_s30 = scalar_select %p1166_p6, 1, 0 }
  0x12   : > { %p1171_p8 = pnand %p722_p5, %p219_p7  ;;  %s231_s9 = sshll.u32 %s1071_s8, 4  ;;  %s232_s9 = int_to_ptr.vmem [resolvable:$true] %s231_s9 }
  0x13   : > { %s39_s11 = sadd.s32 1, %s1065_s25  ;;  %s1466_s1 = sld [smem:[#allocation15_spill]] }
  0x14   : > { %s1464_s7 = scalar_select %p1171_p8, 1, 0 }
  0x15   : > { %p778_p9 = pneg %p1171_p8 }
  0x17   : > { %p1180_p11 = pnand %p778_p9, %p1457_p1 }
  0x19   : > { %s865_s14 = scalar_lea.hbm %s1466_s1, 512  ;;  %p867_p13 = pneg %p1180_p11 }
  0x1a   : > { %p866_p12 = scmp.ne.s32.totalorder %s1466_s1, %s865_s14  ;;  %p872_p5 = scmp.lt.u32.totalorder %s865_s14, %s1466_s1 }
  0x1c   : > { %p868_p0 = pnand %p867_p13, %p866_p12 }
  0x1e   : > { %p869_p3 = pneg %p868_p0 }
  0x20   : > { %p874_p7 = pnand %p872_p5, %p869_p3 }
  0x22   : > { %877 = shalt.err (!%p874_p7)
}
  0x23   : > { %s878_s19 = scalar_lea.vmem %s232_s9, 512  ;;  %p886_p2 = scmp.lt.s32.totalorder %s232_s9, %s232_s9 }
  0x24   : > { %p879_p9 = scmp.ne.s32.totalorder %s232_s9, %s878_s19  ;;  %p887_p6 = scmp.lt.s32.totalorder %s878_s19, %s878_s19 }
  0x26   : > { %p881_p10 = pnand %p879_p9, %p867_p13  ;;  %p888_p4 = por %p887_p6, %p886_p2 }
  0x28   : > { %p882_p1 = pneg %p881_p10 }
  0x2a   : > { %p889_p8 = pnand %p888_p4, %p882_p1 }
  0x2c   : > { %892 = shalt.err (!%p889_p8)
}
  0x2d   : > { %s1072_s20 = smov 128   ;;  %s1073_s8 = smov 8  }
  0x2e   : > { %781 = dma.hbm_to_vmem [thread:$0]  (!%p1180_p11), %s1466_s1, 512, %s232_s9, [#allocation6], %s1072_s20, %s1072_s20, %s1073_s8  }
  0x2f   : > { %p41_p1 = scmp.ge.s32.totalorder %s39_s11, 2  ;;  %s48_s14 = sadd.s32 1, %s1057_s23 }
  0x30   : > { %p55_p2 = scmp.ne.s32.totalorder %s1057_s23, %s1053_s22  ;;  %p56_p4 = scmp.eq.s32.totalorder %s1069_s26, 0 }
  0x31   : > { %s1484_s11 = smov (%p41_p1, %s39_s11), 0  ;;  %p1468_p8 = scmp.eq.s32.totalorder %s1150_s27, 1 }
  0x32   : > { %p1207_p6 = por %p56_p4, %p55_p2  ;;  %s43_s10 = ssub.s32 %s1065_s25, %s1484_s11 }
  0x33   : > { %p1213_p10 = por %p1468_p8, %p55_p2  ;;  %p797_p12 = scmp.lt.s32.totalorder %s1069_s26, 2 }
  0x34   : > { %p46_p11 = scmp.eq.s32.totalorder %s43_s10, 0  ;;  %s251_s9 = sand.u32 1, %s1057_s23  }
  0x35   : > { %s725_s17 = sshll.u32 %s251_s9, 3  ;;  %s726_s19 = sshll.u32 %s1065_s25, 7 }
  0x36   : > { %s1222_s18 = scalar_select %p46_p11, %s1057_s23, %s48_s14  }
  0x37   : > { %s1228_s12 = scalar_lea.hbm %s1450_s0, %s726_s19  ;;  %s255_s13 = scalar_lea.vmem [#allocation2], %s725_s17 }
  0x38   : > { %s263_s28 = sshll.u32 %s255_s13, 4  ;;  %p1234_p13 = pnand %p797_p12, %p1207_p6  ;;  %s1230_s28 = int_to_ptr.vmem [resolvable:$true] %s263_s28 }
  0x39   : > { %s252_s14 = scalar_lea.sflag [#allocation3], %s251_s9  ;;  %s893_s1 = scalar_lea.hbm %s1228_s12, 128 }
  0x3a   : > { %p894_p0 = scmp.ne.s32.totalorder %s1228_s12, %s893_s1  ;;  %p895_p3 = pneg %p1234_p13 }
  0x3b   : > { %s898_s20 = scalar_lea.hbm %s1450_s0, 256  ;;  %p899_p9 = scmp.lt.u32.totalorder %s1228_s12, %s1450_s0 }
  0x3c   : > { %p896_p5 = pnand %p895_p3, %p894_p0  ;;  %p900_p1 = scmp.lt.u32.totalorder %s898_s20, %s893_s1 }
  0x3d   : > { %p902_p4 = scmp.lt.u32.totalorder %s893_s1, %s1228_s12 }
  0x3e   : > { %p897_p7 = pneg %p896_p5  ;;  %p901_p2 = por %p900_p1, %p899_p9 }
  0x40   : > { %p903_p6 = por %p902_p4, %p901_p2 }
  0x42   : > { %p904_p8 = pnand %p903_p6, %p897_p7 }
  0x44   : > { %907 = shalt.err (!%p904_p8)
}
  0x45   : > { %s908_s9 = scalar_lea.vmem %s1230_s28, 128  ;;  %s1074_s13 = smov [#allocation2]  }
  0x46   : > { %p909_p12 = scmp.ne.s32.totalorder %s1230_s28, %s908_s9  ;;  %s913_s17 = sshll.u32 %s1074_s13, 4  ;;  %s914_s17 = int_to_ptr.vmem [resolvable:$false] %s913_s17 }
  0x47   : > { %s915_s19 = scalar_lea.vmem %s914_s17, 256  ;;  %p916_p5 = scmp.lt.s32.totalorder %s1230_s28, %s914_s17 }
  0x48   : > { %p911_p11 = pnand %p909_p12, %p895_p3  ;;  %p917_p9 = scmp.lt.s32.totalorder %s915_s19, %s908_s9 }
  0x4a   : > { %p912_p0 = pneg %p911_p11  ;;  %p918_p1 = por %p917_p9, %p916_p5 }
  0x4c   : > { %p919_p2 = pnand %p918_p1, %p912_p0 }
  0x4e   : > { %922 = shalt.err (!%p919_p2)
}
  0x4f   : > { %785 = dma.hbm_to_vmem [thread:$0]  (!%p1234_p13), %s1228_s12, 128, %s1230_s28, %s252_s14  }
  0x50   : > { %p1471_p7 = scmp.ne.s32.totalorder %s1464_s7, 0 }
  0x51   : > { %s1266_s1 = sand.u32 (!%p1471_p7), 1, %s1053_s22   ;;  %p1472_p3 = scmp.ne.s32.totalorder (!%p1471_p7), %s1462_s29, 0 }
  0x52   : > { %272 = sbr.rel (%p1471_p7) target bundleno = 1314 (0x522), region = 36  ;;  %s1269_s20 = sshll.u32 (!%p1471_p7), %s1266_s1, 3 }
  0x53   : > { %s275_s15 = scalar_lea.sflag (!%p1471_p7), [#allocation3], %s1266_s1  ;;  %s278_s8 = scalar_lea.vmem (!%p1471_p7), [#allocation2], %s1269_s20 }
  0x59   : > { %1032 = dma.done.wait (%p1472_p3), %s275_s15, 128  }
  0x5a   : > { %1034 = vsyncadd (%p1472_p3), %s275_s15, 4294967168  ;;  %p1473_p13 = scmp.eq.s32.totalorder %s1150_s27, 0 }
  0x5c   : > { %1036 = dma.done.wait (%p1473_p13), [#allocation6], 512   ;;  %p1474_p4 = pmov %p1473_p13 }
  0x5d   : > { %vm324_vm0 = vcmask 261120   ;;  %v323_v0 = vld [vmem:[%s278_s8] sm:$0xff]  ;;  %v353_v7 = vld [vmem:[#allocation5] sm:$0xff]  ;;  %v354_v8 = vld [vmem:[#allocation5 + $0x8] sm:$0xff]  ;;  %v1075_v10 = vmov 0.0|0.0   ;;  %vm1076_vm1 = vmmov 0  }
  0x5e   : > { %1038 = vsyncadd (%p1474_p4), [#allocation6], 4294966784  ;;  %v325_v1 = vsel %vm324_vm0, %v323_v0, 0.0  ;;  %v355_v9 = vld [vmem:[#allocation5 + $0x10] sm:$0xff]  ;;  %760 = vmatprep.subr.bf16.mxu0 %v1075_v10  ;;  %v761_v11 = vpack.c.bf16 %v354_v8, %v353_v7  ;;  %v356_v12 = vld [vmem:[#allocation5 + $0x18] sm:$0xff]  ;;  %v1077_v13 = vmov 0.0  }
  0x5f   : > { %326 = vadd.xlane.f32.xlu0 %v325_v1  ;;  %757 = vmatprep.mubr.msk.f32.mxu0 %vm1076_vm1, %v1077_v13  ;;  %v764_v14 = vpack.c.bf16 %v356_v12, %v355_v9  ;;  %v1286_v19 = vld [vmem:[%s1452_s2] ss:$0 sm:$0xff]  ;;  %s1078_s10 = smov 96   ;;  %s1079_s14 = smov 64  }
  0x60   : > { %762 = vmatpush3.bf16.msra.mxu0 %v761_v11  ;;  %v1291_v21 = vld [vmem:[%s1453_s3] ss:$0 sm:$0xff]  ;;  %s1080_s9 = smov 32   ;;  %s1316_s13 = sshll.u32 %s1061_s24, 7 }
  0x61   : > { %763 = vmatprep.subr.bf16.mxu0 %v1075_v10  ;;  %s306_s17 = scalar_lea.vmem [#allocation7], %s1269_s20  ;;  %s1324_s28 = scalar_lea.hbm %s1454_s4, %s1316_s13 }
  0x62   : > { %s539_s19 = sshll.u32 %s306_s17, 4  ;;  %s515_s24 = scalar_lea.sflag [#allocation4], %s1266_s1  ;;  %s1326_s19 = int_to_ptr.vmem [resolvable:$true] %s539_s19 }
  0x63   : > { %s923_s29 = scalar_lea.vmem %s1326_s19, 128  ;;  %s1081_s7 = smov [#allocation7]  }
  0x64   : > { %765 = vmatpush3.bf16.msra.mxu0 %v764_v14  ;;  %p924_p6 = scmp.ne.s32.totalorder %s1326_s19, %s923_s29  ;;  %s927_s12 = sshll.u32 %s1081_s7, 4  ;;  %s928_s12 = int_to_ptr.vmem [resolvable:$false] %s927_s12 }
  0x65   : > { %p930_p11 = scmp.lt.s32.totalorder %s1326_s19, %s928_s12 }
  0x66   : > { %p925_p8 = pnand %p924_p6, %p1213_p10 }
  0x68   : > { %p926_p12 = pneg %p925_p8 }
  0xec   : > { %v327_v2 = vpop.xlane.xlu0 %326 }
  0xed   : > { %v329_v3 = vmul.f32 0.03125, %v327_v2 }
  0xef   : > { %v330_v4 = vsub.f32 %v323_v0, %v329_v3 }
  0xf1   : > { %v331_v5 = vmul.f32 %v330_v4, %v330_v4 }
  0xf3   : > { %v332_v6 = vsel %vm324_vm0, %v331_v5, 0.0 }
  0xf4   : > { %333 = vadd.xlane.f32.xlu0 %v332_v6 }
 0x181   : > { %v334_v15 = vpop.xlane.xlu0 %333 }
 0x182   : > { %v335_v16 = vmul.f32 0.03125, %v334_v15 }
 0x184   : > { %v336_v17 = vadd.f32 1e-05, %v335_v16 }
 0x186   : > { %857 = vrsqrt.f32 %v336_v17 }
 0x190   : > { %v858_v18 = vpop.eup %857 }
 0x191   : > { %v338_v20 = vmul.f32 %v858_v18, %v330_v4 }
 0x193   : > { %v345_v22 = vmul.f32 %v1286_v19, %v338_v20 }
 0x195   : > { %v352_v23 = vadd.f32 %v1291_v21, %v345_v22 }
 0x197   : > { %758 = vmatmul.mubr.msk.f32.vlgmr.msra.gmra.mrb[0].mxu0 %vm324_vm0, %v352_v23 }
 0x26a   : > { %v426_v24 = vpop.f32.mrb[0].mxu0 }
 0x26b   : > { %447 = vrot.lane.b32.xlu1 %v426_v24, %s1078_s10  ;;  %v759_v25 = vpop.f32.mrb[1].mxu0  ;;  %v430_v38 = vsel %vm324_vm0, %v426_v24, 0.0 }
 0x26f   : > { %475 = vrot.lane.b32.xlu1 %v426_v24, %s1079_s14 }
 0x2dd   : > { %v448_v26 = vpop.permute.xlu1 %447 }
 0x2de   : > { %v450_v27 = vsel %vm324_vm0, %v448_v26, 0.0 }
 0x2df   : > { %451 = vadd.xlane.f32.xlu0 %v450_v27 }
 0x2e1   : > { %v476_v28 = vpop.permute.xlu1 %475 }
 0x2e2   : > { %v478_v29 = vsel %vm324_vm0, %v476_v28, 0.0 }
 0x2e3   : > { %479 = vadd.xlane.f32.xlu1 %v478_v29 }
 0x2f4   : > { %467 = vrot.lane.b32.xlu1 %v1286_v19, %s1080_s9 }
 0x2f8   : > { %471 = vrot.lane.b32.xlu1 %v1291_v21, %s1080_s9 }
 0x36c   : > { %v452_v30 = vpop.xlane.xlu0 %451 }
 0x36d   : > { %v453_v31 = vmul.f32 0.03125, %v452_v30 }
 0x36f   : > { %v454_v32 = vsub.f32 %v426_v24, %v453_v31 }
 0x370   : > { %v480_v33 = vpop.xlane.xlu1 %479 }
 0x371   : > { %v481_v34 = vmul.f32 0.03125, %v480_v33  ;;  %v455_v35 = vmul.f32 %v454_v32, %v454_v32 }
 0x373   : > { %v482_v36 = vsub.f32 %v426_v24, %v481_v34  ;;  %457 = vrot.lane.b32.xlu0 %v455_v35, %s1078_s10 }
 0x374   : > { %v468_v48 = vpop.permute.xlu1 %467 }
 0x375   : > { %v483_v37 = vmul.f32 %v482_v36, %v482_v36 }
 0x377   : > { %485 = vrot.lane.b32.xlu0 %v483_v37, %s1079_s14 }
 0x378   : > { %v472_v49 = vpop.permute.xlu1 %471 }
 0x396   : > { %431 = vadd.xlane.f32.xlu0 %v430_v38 }
 0x3ac   : > { %495 = vrot.lane.b32.xlu0 %v1286_v19, %s1079_s14 }
 0x3e5   : > { %v458_v39 = vpop.permute.xlu0 %457 }
 0x3e6   : > { %v460_v40 = vsel %vm324_vm0, %v458_v39, 0.0 }
 0x3e7   : > { %461 = vadd.xlane.f32.xlu1 %v460_v40 }
 0x3e9   : > { %v486_v41 = vpop.permute.xlu0 %485 }
 0x3ea   : > { %v488_v42 = vsel %vm324_vm0, %v486_v41, 0.0 }
 0x3eb   : > { %489 = vadd.xlane.f32.xlu1 %v488_v42 }
 0x3fc   : > { %499 = vrot.lane.b32.xlu1 %v1291_v21, %s1079_s14 }
 0x423   : > { %v432_v43 = vpop.xlane.xlu0 %431 }
 0x424   : > { %v433_v44 = vmul.f32 0.03125, %v432_v43 }
 0x426   : > { %v434_v45 = vsub.f32 %v426_v24, %v433_v44 }
 0x427   : > { %v496_v60 = vpop.permute.xlu0 %495 }
 0x428   : > { %v435_v46 = vmul.f32 %v434_v45, %v434_v45 }
 0x42a   : > { %v436_v47 = vsel %vm324_vm0, %v435_v46, 0.0 }
 0x42b   : > { %437 = vadd.xlane.f32.xlu1 %v436_v47 }
 0x474   : > { %v462_v50 = vpop.xlane.xlu1 %461 }
 0x475   : > { %v463_v51 = vmul.f32 0.03125, %v462_v50 }
 0x477   : > { %v464_v52 = vadd.f32 1e-05, %v463_v51 }
 0x478   : > { %v490_v53 = vpop.xlane.xlu1 %489 }
 0x479   : > { %859 = vrsqrt.f32 %v464_v52  ;;  %v491_v54 = vmul.f32 0.03125, %v490_v53 }
 0x47b   : > { %v492_v55 = vadd.f32 1e-05, %v491_v54 }
 0x47c   : > { %v500_v63 = vpop.permute.xlu1 %499 }
 0x47d   : > { %861 = vrsqrt.f32 %v492_v55 }
 0x483   : > { %v860_v56 = vpop.eup %859 }
 0x484   : > { %v466_v57 = vmul.f32 %v860_v56, %v454_v32 }
 0x486   : > { %v470_v58 = vmul.f32 %v468_v48, %v466_v57 }
 0x487   : > { %v862_v59 = vpop.eup %861 }
 0x488   : > { %v494_v61 = vmul.f32 %v862_v59, %v482_v36  ;;  %v474_v62 = vadd.f32 %v472_v49, %v470_v58 }
 0x48a   : > { %v498_v0 = vmul.f32 %v496_v60, %v494_v61  ;;  %505 = vrot.lane.b32.xlu0 %v474_v62, %s1078_s10  ;;  %s929_s10 = scalar_lea.vmem %s928_s12, 256 }
 0x48b   : > { %p931_p0 = scmp.lt.s32.totalorder %s929_s10, %s923_s29 }
 0x48c   : > { %v502_v1 = vadd.f32 %v500_v63, %v498_v0 }
 0x48d   : > { %p932_p5 = por %p931_p0, %p930_p11 }
 0x48e   : > { %510 = vrot.lane.b32.xlu0 %v502_v1, %s1079_s14 }
 0x48f   : > { %p933_p9 = pnand %p932_p5, %p926_p12 }
 0x4b8   : > { %v438_v2 = vpop.xlane.xlu1 %437 }
 0x4b9   : > { %v439_v3 = vmul.f32 0.03125, %v438_v2 }
 0x4bb   : > { %v440_v4 = vadd.f32 1e-05, %v439_v3 }
 0x4bd   : > { %863 = vrsqrt.f32 %v440_v4 }
 0x4c7   : > { %v864_v5 = vpop.eup %863 }
 0x4c8   : > { %v442_v6 = vmul.f32 %v864_v5, %v434_v45 }
 0x4ca   : > { %v443_v7 = vmul.f32 %v1286_v19, %v442_v6 }
 0x4cc   : > { %v444_v8 = vadd.f32 %v1291_v21, %v443_v7 }
 0x4ce   : > { %v445_v9 = vmul.f32 0.17677669, %v444_v8 }
 0x4d0   : > { %503 = vst.msk [vmem:[%s306_s17] sm:$0xff] %vm324_vm0, %v445_v9 }
 0x4d1   : > { %936 = shalt.err (!%p933_p9)
}
 0x4d2   : > { %s937_s1 = scalar_lea.hbm %s1324_s28, 128  ;;  %s941_s17 = scalar_lea.hbm %s1454_s4, 256 }
 0x4d3   : > { %p938_p1 = scmp.ne.s32.totalorder %s1324_s28, %s937_s1  ;;  %p942_p3 = scmp.lt.u32.totalorder %s1324_s28, %s1454_s4 }
 0x4d4   : > { %p943_p13 = scmp.lt.u32.totalorder %s941_s17, %s937_s1  ;;  %p945_p6 = scmp.lt.u32.totalorder %s937_s1, %s1324_s28 }
 0x4d5   : > { %p939_p2 = pnand %p938_p1, %p1213_p10 }
 0x4d6   : > { %p944_p4 = por %p943_p13, %p942_p3 }
 0x4d7   : > { %p940_p7 = pneg %p939_p2 }
 0x4d8   : > { %p946_p8 = por %p945_p6, %p944_p4 }
 0x4da   : > { %p947_p12 = pnand %p946_p8, %p940_p7 }
 0x4dc   : > { %950 = shalt.err (!%p947_p12)
}
 0x4dd   : > { %772 = dma.vmem_to_hbm [thread:$0]  (%p1213_p10), %s1326_s19, 128, %s1324_s28, %s515_s24  }
 0x4de   : > { %s519_s29 = sand.u32 1, %s1150_s27   ;;  %s313_s7 = scalar_lea.vmem [#allocation8], %s1269_s20 }
 0x4df   : > { %s553_s12 = sshll.u32 %s313_s7, 4  ;;  %s1357_s1 = scalar_lea.hbm %s1455_s5, %s1316_s13  ;;  %s1359_s12 = int_to_ptr.vmem [resolvable:$true] %s553_s12 }
 0x4e0   : > { %s320_s9 = scalar_lea.vmem [#allocation10], %s1269_s20  ;;  %s1367_s27 = scalar_lea.sflag [#allocation9], %s519_s29 }
 0x4e1   : > { %s1364_s17 = sshll.u32 %s320_s9, 4  ;;  %s951_s19 = scalar_lea.vmem %s1359_s12, 128  ;;  %s1398_s17 = int_to_ptr.vmem [resolvable:$true] %s1364_s17 }
 0x4e2   : > { %p952_p11 = scmp.ne.s32.totalorder %s1359_s12, %s951_s19  ;;  %s1082_s28 = smov [#allocation8]  }
 0x4e3   : > { %s955_s24 = sshll.u32 %s1082_s28, 4  ;;  %s956_s24 = int_to_ptr.vmem [resolvable:$false] %s955_s24 }
 0x4e4   : > { %p953_p0 = pnand %p952_p11, %p1213_p10  ;;  %s957_s15 = scalar_lea.vmem %s956_s24, 256 }
 0x4e5   : > { %p958_p9 = scmp.lt.s32.totalorder %s1359_s12, %s956_s24  ;;  %p959_p1 = scmp.lt.s32.totalorder %s957_s15, %s951_s19 }
 0x4e6   : > { %p954_p5 = pneg %p953_p0 }
 0x4e7   : > { %p960_p2 = por %p959_p1, %p958_p9 }
 0x4e9   : > { %p961_p7 = pnand %p960_p2, %p954_p5 }
 0x4fc   : > { %v506_v10 = vpop.permute.xlu0 %505 }
 0x4fd   : > { %508 = vst.msk [vmem:[%s313_s7] sm:$0xff] %vm324_vm0, %v506_v10 }
 0x4fe   : > { %964 = shalt.err (!%p961_p7)
}
 0x4ff   : > { %s965_s8 = scalar_lea.hbm %s1357_s1, 128  ;;  %s969_s10 = scalar_lea.hbm %s1455_s5, 256 }
 0x500   : > { %p966_p3 = scmp.ne.s32.totalorder %s1357_s1, %s965_s8  ;;  %p970_p6 = scmp.lt.u32.totalorder %s1357_s1, %s1455_s5 }
 0x501   : > { %p971_p8 = scmp.lt.u32.totalorder %s969_s10, %s965_s8  ;;  %p973_p11 = scmp.lt.u32.totalorder %s965_s8, %s1357_s1 }
 0x502   : > { %p967_p13 = pnand %p966_p3, %p1213_p10 }
 0x503   : > { %p972_p12 = por %p971_p8, %p970_p6 }
 0x504   : > { %p968_p4 = pneg %p967_p13 }
 0x505   : > { %p974_p0 = por %p973_p11, %p972_p12 }
 0x507   : > { %p975_p5 = pnand %p974_p0, %p968_p4 }
 0x509   : > { %978 = shalt.err (!%p975_p5)
}
 0x50a   : > { %773 = dma.vmem_to_hbm [thread:$0]  (%p1213_p10), %s1359_s12, 128, %s1357_s1, %s1367_s27   ;;  %v511_v11 = vpop.permute.xlu0 %510 }
 0x50b   : > { %s1395_s15 = scalar_lea.hbm %s1456_s6, %s1316_s13  ;;  %513 = vst.msk [vmem:[%s320_s9] sm:$0xff] %vm324_vm0, %v511_v11  ;;  %s979_s8 = scalar_lea.vmem %s1398_s17, 128 }
 0x50c   : > { %p980_p9 = scmp.ne.s32.totalorder %s1398_s17, %s979_s8  ;;  %s1083_s12 = smov [#allocation10]  }
 0x50d   : > { %s983_s1 = sshll.u32 %s1083_s12, 4  ;;  %s984_s1 = int_to_ptr.vmem [resolvable:$false] %s983_s1 }
 0x50e   : > { %p981_p1 = pnand %p980_p9, %p1213_p10  ;;  %s985_s29 = scalar_lea.vmem %s984_s1, 256 }
 0x50f   : > { %p986_p7 = scmp.lt.s32.totalorder %s1398_s17, %s984_s1  ;;  %p987_p3 = scmp.lt.s32.totalorder %s985_s29, %s979_s8 }
 0x510   : > { %p982_p2 = pneg %p981_p1 }
 0x511   : > { %p988_p13 = por %p987_p3, %p986_p7 }
 0x513   : > { %p989_p4 = pnand %p988_p13, %p982_p2 }
 0x515   : > { %992 = shalt.err (!%p989_p4)
}
 0x516   : > { %s993_s20 = scalar_lea.hbm %s1395_s15, 128  ;;  %s997_s7 = scalar_lea.hbm %s1456_s6, 256 }
 0x517   : > { %p994_p6 = scmp.ne.s32.totalorder %s1395_s15, %s993_s20  ;;  %p998_p11 = scmp.lt.u32.totalorder %s1395_s15, %s1456_s6 }
 0x518   : > { %p999_p0 = scmp.lt.u32.totalorder %s997_s7, %s993_s20  ;;  %p1001_p9 = scmp.lt.u32.totalorder %s993_s20, %s1395_s15 }
 0x519   : > { %p995_p8 = pnand %p994_p6, %p1213_p10 }
 0x51a   : > { %p1000_p5 = por %p999_p0, %p998_p11 }
 0x51b   : > { %p996_p12 = pneg %p995_p8 }
 0x51c   : > { %p1002_p1 = por %p1001_p9, %p1000_p5 }
 0x51e   : > { %p1003_p2 = pnand %p1002_p1, %p996_p12 }
 0x520   : > { %1006 = shalt.err (!%p1003_p2)
}
 0x521   : > { %774 = dma.vmem_to_hbm [thread:$0]  (%p1213_p10), %s1398_s17, 128, %s1395_s15, %s1367_s27  }
 0x522 PF: > { %s579_s28 = sand.u32 1, %s1049_s21   ;;  %p1475_p7 = scmp.ne.s32.totalorder %s1463_s30, 0 }
 0x523   : > { %p1476_p3 = scmp.ge.s32.totalorder %s1069_s26, 2  ;;  %s580_s19 = scalar_lea.sflag [#allocation4], %s579_s28 }
 0x525   : > { %p787_p13 = pnand %p1476_p3, %p1475_p7 }
 0x527   : > { %1040 = dma.done.wait (!%p787_p13), %s580_s19, 128  }
 0x528   : > { %1042 = vsyncadd (!%p787_p13), %s580_s19, 4294967168  ;;  %s1477_s24 = sadd.s32 4294967294, %s1069_s26  }
 0x529   : > { %s588_s8 = sand.u32 1, %s1477_s24  }
 0x52a   : > { %s589_s12 = scalar_lea.sflag [#allocation9], %s588_s8 }
 0x52b   : > { %1044 = dma.done.wait (!%p787_p13), %s589_s12, 256  }
 0x52c   : > { %1046 = vsyncadd (!%p787_p13), %s589_s12, 4294967040  ;;  %s27_s26 = sadd.s32 1, %s1069_s26   ;;  %s1478_s21 = smov %s1053_s22 }
 0x52d   : > { %p24_p10 = scmp.ge.s32.totalorder %s27_s26, 4   ;;  %s1479_s22 = smov %s1057_s23 }
 0x52e   : > { %s1480_s23 = smov %s1222_s18  ;;  %s1481_s24 = smov %s1065_s25 }
 0x52f   : > { %s1482_s25 = smov %s1484_s11  ;;  %26 = sbr.rel (!%p24_p10) target bundleno = 11 (0xb), region = 117 }
 0x536   :  { %603 = vsyncpa [#allocation3], 1 }
 0x537   :  { %605 = vsyncpa [#allocation3 + $0x1], 1 }
 0x538   :  { %606 = vsyncpa [#allocation6], 1 }
 0x539   :  { %607 = vsyncpa [#allocation4], 1 }
 0x53a   :  { %609 = vsyncpa [#allocation4 + $0x1], 1 }
 0x53b   :  { %610 = vsyncpa [#allocation9], 1 }
 0x53c   :  { %612 = vsyncpa [#allocation9 + $0x1], 1 }

</bundles_post_ra>
